<compile_context>
chip_gen: v6e
topology: v6e:2x2x1
jax: 0.10.0
libtpu: 0.0.40
codegen_flags: <defaults>
</compile_context>

<pallas_src>
import functools

import numpy as np
import jax
import jax.numpy as jnp
from jax.experimental import pallas as pl
from jax.experimental.pallas import tpu as pltpu

_LANE = 128


def _ce_kernel(logits_ref, labels_ref, out_ref, *, ignore_index, hw, tp, mask_tail):
    t = pl.program_id(1)

    # [2, TP] output block is resident across the tile axis: zero on the first
    # tile of each batch row, accumulate every step, auto-writeback on b change.
    @pl.when(t == 0)
    def _():
        out_ref[...] = jnp.zeros_like(out_ref)

    logits = logits_ref[...].astype(jnp.float32)      # [C, TP] (cast in-kernel)
    labels = labels_ref[...]                          # [1, TP] int32

    # numerically stable log-sum-exp over the class (sublane) axis
    m = jnp.max(logits, axis=0, keepdims=True)                    # [1, TP]
    sumexp = jnp.sum(jnp.exp(logits - m), axis=0, keepdims=True)  # [1, TP]
    lse = m + jnp.log(sumexp)                                     # [1, TP]

    # true-class logit via one-hot compare (no dynamic gather on TPU)
    class_ids = jax.lax.broadcasted_iota(jnp.int32, logits.shape, 0)
    true_logit = jnp.sum(jnp.where(class_ids == labels, logits, 0.0),
                         axis=0, keepdims=True)                   # [1, TP]

    valid = labels != ignore_index                                # [1, TP]
    if mask_tail:
        # last tile may read past HW (no wrapper pad): mask ragged tail lanes
        lane = jax.lax.broadcasted_iota(jnp.int32, labels.shape, 1)
        valid = jnp.logical_and(valid, t * tp + lane < hw)

    nll = jnp.where(valid, lse - true_logit, 0.0)                 # [1, TP]

    # lane-wide partial accumulation (no per-step cross-lane reduce)
    out_ref[0:1, :] += nll
    out_ref[1:2, :] += valid.astype(jnp.float32)


def _pick_tile(hw, num_classes, itemsize):
    """Pixel-tile width: big enough to hide per-step overhead, bounded by VMEM."""
    hw_ceil = -(-hw // _LANE) * _LANE
    target_block_bytes = 4 * 1024 * 1024      # ~4 MiB of logits per block
    budget_bytes = 24 * 1024 * 1024           # total double-buffered working set
    # logits (double-buffered) + labels/out blocks (padded to 8 sublanes, x2)
    per_lane_ws = 2 * num_classes * itemsize + 128
    tp = min(target_block_bytes // max(1, num_classes * itemsize),
             budget_bytes // per_lane_ws,
             128 * 1024)
    tp = max(_LANE, (tp // _LANE) * _LANE)
    return min(tp, hw_ceil)


def _cross_entropy_single(preds, labels, ignore_index):
    B, C, H, W = preds.shape
    LH, LW = labels.shape[-2:]
    if (H, W) != (LH, LW):
        # TODO(synk): F.interpolate(bilinear, align_corners=False) is done with
        # plain-JAX jax.image.resize outside the kernel (not hit by the test).
        preds = jax.image.resize(preds, (B, C, LH, LW), method="bilinear")
        H, W = LH, LW

    hw = H * W
    tp = _pick_tile(hw, C, jnp.dtype(preds.dtype).itemsize)
    num_tiles = -(-hw // tp)
    mask_tail = (num_tiles * tp) != hw

    # reshapes only: no transpose, no pad, no dtype upcast -> no extra HBM pass
    logits = preds.reshape(B, C, hw)
    labs = labels.reshape(B, 1, hw).astype(jnp.int32)

    parts = pl.pallas_call(
        functools.partial(_ce_kernel, ignore_index=ignore_index, hw=hw, tp=tp,
                          mask_tail=mask_tail),
        grid=(B, num_tiles),
        in_specs=[
            pl.BlockSpec((None, C, tp), lambda b, t: (b, 0, t)),
            pl.BlockSpec((None, 1, tp), lambda b, t: (b, 0, t)),
        ],
        out_specs=pl.BlockSpec((None, 2, tp), lambda b, t: (b, 0, 0)),
        out_shape=jax.ShapeDtypeStruct((B, 2, tp), jnp.float32),
        compiler_params=pltpu.CompilerParams(
            # batch axis is independent (per-batch partial outputs) -> parallel
            # (uses both v7x TensorCores); tile axis carries the accumulation.
            dimension_semantics=("parallel", "arbitrary"),
            vmem_limit_bytes=40 * 1024 * 1024),
    )(logits, labs)

    nll_sum = jnp.sum(parts[:, 0, :])
    # per-lane counts are exact small integers stored in f32; sum them as int32
    cnt = jnp.sum(parts[:, 1, :].astype(jnp.int32))
    # TODO(synk): torch yields NaN when every pixel is ignore_index; we return 0.0.
    return jnp.where(cnt > 0, nll_sum / jnp.maximum(cnt, 1).astype(jnp.float32),
                     jnp.float32(0.0))


def cross_entropy_loss(preds, labels, ignore_index=255, aux_weights=(1, 0.4)):
    """Matches CrossEntropy.forward: list of preds -> weighted sum of losses."""
    # TODO(synk): the optional per-class `weight` tensor of nn.CrossEntropyLoss is
    # not implemented (module default is weight=None). zip() truncates exactly
    # like the PyTorch reference does.
    if isinstance(preds, (list, tuple)):
        return sum(w * _cross_entropy_single(p, labels, ignore_index)
                   for p, w in zip(preds, aux_weights))
    return _cross_entropy_single(preds, labels, ignore_index)


def _ce_reference(logits, labels, ignore_index):
    """Pure-numpy nn.CrossEntropyLoss(ignore_index, reduction='mean')."""
    B, C, H, W = logits.shape
    x = logits - logits.max(axis=1, keepdims=True)
    logp = x - np.log(np.exp(x).sum(axis=1, keepdims=True))
    logp = logp.transpose(0, 2, 3, 1).reshape(-1, C)
    lab = labels.reshape(-1)
    valid = lab != ignore_index
    lp = logp[valid]
    lb = lab[valid]
    nll = -lp[np.arange(lp.shape[0]), lb]
    return float(nll.mean())


if __name__ == "__main__":
    key = jax.random.PRNGKey(0)
    B, C, H, W = 2, 4, 16, 16
    k1, k2, k3 = jax.random.split(key, 3)
    logits = jax.random.normal(k1, (B, C, H, W), dtype=jnp.float32)
    labels = jax.random.randint(k2, (B, H, W), 0, C, dtype=jnp.int32)
    # sprinkle some ignore_index pixels to exercise the masking path
    ign = jax.random.bernoulli(k3, 0.1, (B, H, W))
    labels = jnp.where(ign, 255, labels)

    loss = jax.block_until_ready(cross_entropy_loss(logits, labels, ignore_index=255))
    ref = _ce_reference(np.asarray(logits, dtype=np.float64),
                        np.asarray(labels), 255)
    assert abs(float(loss) - ref) < 1e-4, (float(loss), ref)

    # aux-list path (weighted sum, matches the module's forward on a list)
    loss_aux = jax.block_until_ready(
        cross_entropy_loss([logits, logits], labels, ignore_index=255))
    assert abs(float(loss_aux) - 1.4 * ref) < 2e-4, (float(loss_aux), 1.4 * ref)

    print("KERNEL_OK")
</pallas_src>

<mosaic_0001>
module attributes {stable_mosaic.version = 11 : i64} {
  func.func @_ce_kernel(%arg0: i32, %arg1: i32, %arg2: memref<1x4x256xf32, #tpu.memory_space<vmem>>, %arg3: memref<1x1x256xi32, #tpu.memory_space<vmem>>, %arg4: memref<1x2x256xf32, #tpu.memory_space<vmem>>) attributes {dimension_semantics = [#tpu.dimension_semantics<parallel>, #tpu.dimension_semantics<arbitrary>], iteration_bounds = array<i64: 2, 1>, scalar_prefetch = 0 : i64, scratch_operands = 0 : i64, tpu.core_type = #tpu.core_type<tc>, window_params = [{transform_indices = @transform_0, window_bounds = array<i64: 1, 4, 256>}, {transform_indices = @transform_1, window_bounds = array<i64: 1, 1, 256>}, {transform_indices = @transform_2, window_bounds = array<i64: 1, 2, 256>}]} {
    %c0_i32 = arith.constant 0 : i32
    %0 = arith.cmpi eq, %arg1, %c0_i32 : i32
    %1 = arith.extui %0 : i1 to i32
    %c0_i32_0 = arith.constant 0 : i32
    %2 = arith.cmpi ne, %1, %c0_i32_0 : i32
    scf.if %2 {
      %cst_21 = arith.constant 0.000000e+00 : f32
      %42 = vector.broadcast %cst_21 : f32 to vector<2x256xf32>
      %c0_22 = arith.constant 0 : index
      %c0_23 = arith.constant 0 : index
      %c0_24 = arith.constant 0 : index
      %43 = vector.load %arg4[%c0_22, %c0_23, %c0_24] : memref<1x2x256xf32, #tpu.memory_space<vmem>>, vector<1x2x256xf32>
      %44 = vector.shape_cast %43 : vector<1x2x256xf32> to vector<2x256xf32>
      %45 = vector.shape_cast %42 : vector<2x256xf32> to vector<1x2x256xf32>
      tpu.vector_store %arg4[%c0_22, %c0_23, %c0_24], %45 {strides = array<i32>} : memref<1x2x256xf32, #tpu.memory_space<vmem>>, vector<1x2x256xf32>,
    } else {
    }
    %c0 = arith.constant 0 : index
    %c0_1 = arith.constant 0 : index
    %c0_2 = arith.constant 0 : index
    %3 = vector.load %arg2[%c0, %c0_1, %c0_2] : memref<1x4x256xf32, #tpu.memory_space<vmem>>, vector<1x4x256xf32>
    %4 = vector.shape_cast %3 : vector<1x4x256xf32> to vector<4x256xf32>
    %c0_3 = arith.constant 0 : index
    %c0_4 = arith.constant 0 : index
    %c0_5 = arith.constant 0 : index
    %5 = vector.load %arg3[%c0_3, %c0_4, %c0_5] : memref<1x1x256xi32, #tpu.memory_space<vmem>>, vector<1x1x256xi32>
    %6 = vector.shape_cast %5 : vector<1x1x256xi32> to vector<1x256xi32>
    %cst = arith.constant dense<0xFF800000> : vector<256xf32>
    %7 = vector.multi_reduction <maximumf>, %4, %cst [0] : vector<4x256xf32> to vector<256xf32>
    %8 = vector.shape_cast %7 : vector<256xf32> to vector<1x256xf32>
    %9 = vector.broadcast %8 : vector<1x256xf32> to vector<4x256xf32>
    %10 = arith.subf %4, %9 : vector<4x256xf32>
    %11 = math.exp %10 : vector<4x256xf32>
    %cst_6 = arith.constant dense<0.000000e+00> : vector<256xf32>
    %12 = vector.multi_reduction <add>, %11, %cst_6 [0] : vector<4x256xf32> to vector<256xf32>
    %13 = vector.shape_cast %12 : vector<256xf32> to vector<1x256xf32>
    %14 = math.log %13 : vector<1x256xf32>
    %15 = arith.addf %8, %14 : vector<1x256xf32>
    %16 = tpu.iota {dimensions = array<i32: 0>} : vector<4x256xi32>
    %17 = vector.broadcast %6 : vector<1x256xi32> to vector<4x256xi32>
    %18 = arith.cmpi eq, %16, %17 : vector<4x256xi32>
    %cst_7 = arith.constant 0.000000e+00 : f32
    %19 = vector.broadcast %cst_7 : f32 to vector<4x256xf32>
    %20 = arith.select %18, %4, %19 : vector<4x256xi1>, vector<4x256xf32>
    %cst_8 = arith.constant dense<0.000000e+00> : vector<256xf32>
    %21 = vector.multi_reduction <add>, %20, %cst_8 [0] : vector<4x256xf32> to vector<256xf32>
    %22 = vector.shape_cast %21 : vector<256xf32> to vector<1x256xf32>
    %c255_i32 = arith.constant 255 : i32
    %23 = vector.broadcast %c255_i32 : i32 to vector<1x256xi32>
    %24 = arith.cmpi ne, %6, %23 : vector<1x256xi32>
    %25 = arith.subf %15, %22 : vector<1x256xf32>
    %cst_9 = arith.constant 0.000000e+00 : f32
    %26 = vector.broadcast %cst_9 : f32 to vector<1x256xf32>
    %27 = arith.select %24, %25, %26 : vector<1x256xi1>, vector<1x256xf32>
    %c0_10 = arith.constant 0 : index
    %c0_11 = arith.constant 0 : index
    %c0_12 = arith.constant 0 : index
    %28 = vector.load %arg4[%c0_10, %c0_11, %c0_12] : memref<1x2x256xf32, #tpu.memory_space<vmem>>, vector<1x1x256xf32>
    %29 = vector.shape_cast %28 : vector<1x1x256xf32> to vector<1x256xf32>
    %30 = arith.addf %29, %27 : vector<1x256xf32>
    %c0_13 = arith.constant 0 : index
    %c0_14 = arith.constant 0 : index
    %c0_15 = arith.constant 0 : index
    %31 = vector.load %arg4[%c0_13, %c0_14, %c0_15] : memref<1x2x256xf32, #tpu.memory_space<vmem>>, vector<1x1x256xf32>
    %32 = vector.shape_cast %31 : vector<1x1x256xf32> to vector<1x256xf32>
    %33 = vector.shape_cast %30 : vector<1x256xf32> to vector<1x1x256xf32>
    tpu.vector_store %arg4[%c0_13, %c0_14, %c0_15], %33 {strides = array<i32>} : memref<1x2x256xf32, #tpu.memory_space<vmem>>, vector<1x1x256xf32>,
    %c0_16 = arith.constant 0 : index
    %c1 = arith.constant 1 : index
    %c0_17 = arith.constant 0 : index
    %34 = vector.load %arg4[%c0_16, %c1, %c0_17] : memref<1x2x256xf32, #tpu.memory_space<vmem>>, vector<1x1x256xf32>
    %35 = vector.shape_cast %34 : vector<1x1x256xf32> to vector<1x256xf32>
    %36 = arith.extui %24 : vector<1x256xi1> to vector<1x256xi32>
    %37 = arith.sitofp %36 : vector<1x256xi32> to vector<1x256xf32>
    %38 = arith.addf %35, %37 : vector<1x256xf32>
    %c0_18 = arith.constant 0 : index
    %c1_19 = arith.constant 1 : index
    %c0_20 = arith.constant 0 : index
    %39 = vector.load %arg4[%c0_18, %c1_19, %c0_20] : memref<1x2x256xf32, #tpu.memory_space<vmem>>, vector<1x1x256xf32>
    %40 = vector.shape_cast %39 : vector<1x1x256xf32> to vector<1x256xf32>
    %41 = vector.shape_cast %38 : vector<1x256xf32> to vector<1x1x256xf32>
    tpu.vector_store %arg4[%c0_18, %c1_19, %c0_20], %41 {strides = array<i32>} : memref<1x2x256xf32, #tpu.memory_space<vmem>>, vector<1x1x256xf32>,
    return
  }
  func.func @transform_0(%arg0: i32, %arg1: i32) -> (i32, i32, i32) {
    %c0_i32 = arith.constant 0 : i32
    %c0_i32_0 = arith.constant 0 : i32
    return %arg0, %c0_i32, %arg1 : i32, i32, i32
  }
  func.func @transform_1(%arg0: i32, %arg1: i32) -> (i32, i32, i32) {
    %c0_i32 = arith.constant 0 : i32
    %c0_i32_0 = arith.constant 0 : i32
    return %arg0, %c0_i32, %arg1 : i32, i32, i32
  }
  func.func @transform_2(%arg0: i32, %arg1: i32) -> (i32, i32, i32) {
    %c0_i32 = arith.constant 0 : i32
    %c0_i32_0 = arith.constant 0 : i32
    %c0_i32_1 = arith.constant 0 : i32
    return %arg0, %c0_i32, %c0_i32_0 : i32, i32, i32
  }
}

</mosaic_0001>

<bundles_post_ra>
// kernel: tpu_custom_call.1
= control target key start
LH: loop header
LB: loop body
LE: loop exit
PB: predicated region body
PF: predicated region fallthrough
CT: control target
= control target key end

     0   :  { %7 = vsyncpa [#allocation3], 0  ;;  %s919_s0 = inlined_call_operand.hbm [shape: f32[2,4,256], index: 0, kind: input, shape index: {}]   ;;  %s920_s1 = inlined_call_operand.hbm [shape: s32[2,1,256], index: 1, kind: input, shape index: {}]   ;;  %s921_s2 = inlined_call_operand.hbm [shape: f32[2,2,256], index: 2, kind: output, shape index: {}]  }
   0x1   :  { %9 = vsyncpa [#allocation3 + $0x1], 0 }
   0x2   :  { %10 = vsyncpa [#allocation6], 0 }
   0x3   :  { %12 = vsyncpa [#allocation6 + $0x1], 0 }
   0x4   :  { %13 = vsyncpa [#allocation4], 0 }
   0x5   :  { %15 = vsyncpa [#allocation4 + $0x1], 0  ;;  %s723_s9 = smov 0   ;;  %s725_s10 = smov 0  }
   0x6   :  { %s727_s11 = smov 0   ;;  %s729_s12 = smov 0  }
   0x7   :  { %s731_s13 = smov 0   ;;  %s733_s14 = smov 0  }
   0x8 LB: > { %s460_s15 = sadd.s32 4294967295, %s701_s14   ;;  %s461_s16 = sadd.s32 4294967294, %s701_s14   ;;  %s701_s14 = sphi %s733_s14, %s21_s14   ;;  %s697_s13 = sphi %s731_s13, %s935_s13   ;;  %s693_s12 = sphi %s729_s12, %s934_s12   ;;  %s689_s11 = sphi %s727_s11, %s933_s11   ;;  %s685_s10 = sphi %s725_s10, %s932_s10   ;;  %s681_s9 = sphi %s723_s9, %s931_s9  }
   0x9   : > { %s33_s17 = sadd.s32 1, %s697_s13  ;;  %s42_s18 = sadd.s32 1, %s689_s11 }
   0xa   : > { %p35_p0 = scmp.ge.s32.totalorder %s33_s17, 2  ;;  %p49_p1 = scmp.ne.s32.totalorder %s689_s11, %s685_s10 }
   0xb   : > { %p50_p2 = scmp.eq.s32.totalorder %s701_s14, 0  ;;  %p55_p3 = scmp.ne.s32.totalorder %s685_s10, %s681_s9 }
   0xc   : > { %s937_s17 = smov (%p35_p0, %s33_s17), 0  ;;  %p56_p5 = scmp.eq.s32.totalorder %s460_s15, 0 }
   0xd   : > { %p764_p4 = por %p50_p2, %p49_p1  ;;  %s37_s20 = ssub.s32 %s697_s13, %s937_s17 }
   0xe   : > { %p107_p6 = scmp.eq.s32.totalorder %s460_s15, 1  ;;  %p40_p7 = scmp.eq.s32.totalorder %s37_s20, 0 }
   0xf   : > { %p770_p8 = por %p56_p5, %p55_p3  ;;  %p113_p10 = scmp.eq.s32.totalorder %s461_s16, 1 }
  0x10   : > { %p774_p9 = por %p107_p6, %p49_p1  ;;  %p502_p13 = scmp.lt.s32.totalorder %s701_s14, 2 }
  0x11   : > { %s779_s23 = scalar_select %p40_p7, %s689_s11, %s42_s18  }
  0x12   : > { %p781_p11 = por %p113_p10, %p55_p3  ;;  %s788_s25 = sand.u32 1, %s689_s11  }
  0x13   : > { %s464_s26 = sshll.u32 %s788_s25, 3  ;;  %s482_s27 = sshll.u32 %s697_s13, 7 }
  0x14   : > { %s145_s30 = scalar_lea.hbm %s919_s0, %s482_s27  ;;  %s137_s3 = scalar_lea.vmem [#allocation2], %s464_s26 }
  0x15   : > { %s147_s4 = sshll.u32 %s137_s3, 4  ;;  %p797_p0 = pnand %p502_p13, %p764_p4  ;;  %s148_s4 = int_to_ptr.vmem [resolvable:$true] %s147_s4 }
  0x16   : > { %p470_p1 = scmp.ge.s32.totalorder %s701_s14, 1  ;;  %p173_p2 = scmp.lt.s32.totalorder %s701_s14, 3 }
  0x17   : > { %s134_s6 = scalar_lea.sflag [#allocation3], %s788_s25  ;;  %p563_p3 = pneg %p797_p0 }
  0x18   : > { %s574_s7 = scalar_lea.vmem %s148_s4, 128  ;;  %s703_s8 = smov [#allocation2]  }
  0x19   : > { %p575_p5 = scmp.ne.s32.totalorder %s148_s4, %s574_s7  ;;  %s579_s15 = sshll.u32 %s703_s8, 4  ;;  %s580_s15 = int_to_ptr.vmem [resolvable:$false] %s579_s15 }
  0x1a   : > { %s581_s16 = scalar_lea.vmem %s580_s15, 256  ;;  %p582_p4 = scmp.lt.s32.totalorder %s148_s4, %s580_s15 }
  0x1b   : > { %p577_p6 = pnand %p575_p5, %p563_p3  ;;  %p583_p10 = scmp.lt.s32.totalorder %s581_s16, %s574_s7 }
  0x1d   : > { %p578_p7 = pneg %p577_p6  ;;  %p584_p13 = por %p583_p10, %p582_p4 }
  0x1f   : > { %p585_p12 = pnand %p584_p13, %p578_p7 }
  0x21   : > { %588 = shalt.err (!%p585_p12)
}
  0x22   : > { %494 = dma.hbm_to_vmem [thread:$0]  (!%p797_p0), %s145_s30, 128, %s148_s4, %s134_s6  }
  0x23   : > { %p815_p5 = pnand %p470_p1, %p173_p2  ;;  %s467_s19 = sshll.u32 %s788_s25, 1 }
  0x24   : > { %s483_s20 = sshll.u32 %s697_s13, 5  ;;  %s158_s29 = scalar_lea.vmem [#allocation5], %s467_s19 }
  0x25   : > { %s166_s28 = scalar_lea.hbm %s920_s1, %s483_s20  ;;  %s168_s3 = sshll.u32 %s158_s29, 4  ;;  %s169_s3 = int_to_ptr.vmem [resolvable:$true] %s168_s3 }
  0x26   : > { %s155_s7 = scalar_lea.sflag [#allocation6], %s788_s25  ;;  %s602_s8 = scalar_lea.vmem %s169_s3, 32 }
  0x27   : > { %p603_p12 = scmp.ne.s32.totalorder %s169_s3, %s602_s8  ;;  %s704_s30 = smov [#allocation5]  }
  0x28   : > { %s607_s4 = sshll.u32 %s704_s30, 4  ;;  %s608_s4 = int_to_ptr.vmem [resolvable:$false] %s607_s4 }
  0x29   : > { %p605_p6 = pnand %p603_p12, %p563_p3  ;;  %s609_s6 = scalar_lea.vmem %s608_s4, 64 }
  0x2a   : > { %p610_p1 = scmp.lt.s32.totalorder %s169_s3, %s608_s4  ;;  %p611_p2 = scmp.lt.s32.totalorder %s609_s6, %s602_s8 }
  0x2b   : > { %p606_p7 = pneg %p605_p6 }
  0x2c   : > { %p612_p4 = por %p611_p2, %p610_p1 }
  0x2e   : > { %p613_p10 = pnand %p612_p4, %p606_p7 }
  0x30   : > { %616 = shalt.err (!%p613_p10)
}
  0x31   : > { %497 = dma.hbm_to_vmem [thread:$0]  (!%p797_p0), %s166_s28, 32, %s169_s3, %s155_s7  }
  0x32   : > { %177 = sbr.rel (%p815_p5) target bundleno = 152 (0x98), region = 28  ;;  %s833_s25 = sand.u32 (!%p815_p5), 1, %s685_s10  }
  0x33   : > { %s471_s15 = sshll.u32 (!%p815_p5), %s833_s25, 3  ;;  %s180_s16 = scalar_lea.sflag (!%p815_p5), [#allocation3], %s833_s25 }
  0x34   : > { %s183_s19 = scalar_lea.vmem (!%p815_p5), [#allocation2], %s471_s15 }
  0x37   : > { %668 = dma.done.wait (%p770_p8), %s180_s16, 128  }
  0x38   : > { %670 = vsyncadd (%p770_p8), %s180_s16, 4294967168  ;;  %s472_s5 = sshll.u32 %s833_s25, 1  ;;  %s189_s18 = scalar_lea.sflag [#allocation6], %s833_s25 }
  0x39   : > { %s192_s20 = scalar_lea.vmem [#allocation5], %s472_s5 }
  0x3a   : > { %672 = dma.done.wait (%p770_p8), %s189_s18, 32  }
  0x3b   : > { %674 = vsyncadd (%p770_p8), %s189_s18, 4294967264  ;;  %s473_s26 = sshll.u32 %s833_s25, 2  ;;  %v705_v0 = vmov 0.0   ;;  %vm230_vm0 = vcmask 1043456   ;;  %v225_v1 = vld [vmem:[%s183_s19] sm:$0xff]  ;;  %v275_v6 = vlaneseq  ;;  %s484_s21 = sshll.u32 %s693_s12, 6 }
  0x3c   : > { %s848_s27 = scalar_lea.vmem [#allocation7], %s473_s26  ;;  %v851_v2 = vld [vmem:[%s192_s20] sm:$0x3]  ;;  %v228_v3 = vcombine.high %v225_v1, %v225_v1  ;;  %v231_v4 = vsel %vm230_vm0, %v225_v1, -inf  ;;  %v706_v61 = vmov 1966171168   ;;  %s351_s7 = scalar_lea.hbm %s921_s2, %s484_s21 }
  0x3d   : > { %224 = vst [vmem:[%s848_s27] sm:$0xf] %v705_v0  ;;  %v232_v5 = vrot.slane %v231_v4, 4  ;;  %vm303_vm1 = vcmp.ne.s32.totalorder %v851_v2, 255  ;;  %vm859_vm2 = vcmp.lt.s32.totalorder %v275_v6, 256  ;;  %v276_v26 = vshrl.u32 %v275_v6, 7  ;;  %s353_s28 = sshll.u32 %s848_s27, 4  ;;  %s354_s28 = int_to_ptr.vmem [resolvable:$true] %s353_s28 }
  0x3e   : > { %v238_v7 = vsel %vm230_vm0, %v228_v3, -inf  ;;  %v475_v9 = vsel %vm303_vm1, 1.0, %v705_v0  ;;  %v310_v62 = vunpack.c.l.s4 %v706_v61  ;;  %s339_s8 = scalar_lea.sflag [#allocation4], %s833_s25  ;;  %s617_s30 = scalar_lea.vmem %s354_s28, 64 }
  0x3f   : > { %v233_v10 = vmax.f32 %v231_v4, %v232_v5  ;;  %v239_v11 = vrot.slane %v238_v7, 4  ;;  %v279_v27 = vsub.s32 0, %v276_v26  ;;  %v283_v28 = vsub.s32 1, %v276_v26  ;;  %p618_p8 = scmp.ne.s32.totalorder %s354_s28, %s617_s30  ;;  %s707_s12 = smov [#allocation7]  }
  0x40   : > { %s621_s4 = sshll.u32 %s707_s12, 4  ;;  %s622_s4 = int_to_ptr.vmem [resolvable:$false] %s621_s4 }
  0x41   : > { %v234_v14 = vrot.slane %v233_v10, 2  ;;  %v240_v15 = vmax.f32 %v238_v7, %v239_v11  ;;  %v280_v29 = vrot.slane %v851_v2, %v279_v27  ;;  %v284_v30 = vrot.slane %v851_v2, %v283_v28  ;;  %p619_p0 = pnand %p618_p8, %p774_p9  ;;  %s623_s6 = scalar_lea.vmem %s622_s4, 128 }
  0x42   : > { %v311_v7 = vunpack.c.0.s8 %v310_v62  ;;  %p624_p13 = scmp.lt.s32.totalorder %s354_s28, %s622_s4  ;;  %p625_p5 = scmp.lt.s32.totalorder %s623_s6, %s617_s30 }
  0x43   : > { %v235_v16 = vmax.f32 %v233_v10, %v234_v14  ;;  %v241_v17 = vrot.slane %v240_v15, 2  ;;  %vm285_vm3 = vcmp.eq.s32.totalorder %v276_v26, %v280_v29  ;;  %vm286_vm4 = vcmp.eq.s32.totalorder %v276_v26, %v284_v30  ;;  %p620_p3 = pneg %p619_p0 }
  0x44   : > { %v474_v8 = vld [vmem:[%s848_s27 + $0x1] ss:$2 sm:$0x3]  ;;  %v287_v35 = vsel %vm285_vm3, %v225_v1, 0.0  ;;  %v288_v39 = vsel %vm286_vm4, %v228_v3, 0.0  ;;  %v314_v11 = vsub.s32 %v311_v7, %v276_v26  ;;  %p626_p12 = por %p625_p5, %p624_p13 }
  0x45   : > { %v336_v13 = vadd.f32 %v475_v9, %v474_v8  ;;  %v236_v18 = vrot.slane %v235_v16, 1  ;;  %v242_v19 = vmax.f32 %v240_v15, %v241_v17  ;;  %v289_v40 = vsel %vm230_vm0, %v287_v35, 0.0 }
  0x46   : > { %v296_v43 = vsel %vm230_vm0, %v288_v39, 0.0  ;;  %v290_v46 = vrot.slane %v289_v40, 4  ;;  %p627_p6 = pnand %p626_p12, %p620_p3 }
  0x47   : > { %476 = vst.msk [vmem:[%s848_s27 + $0x1] ss:$2 sm:$0x3] %vm859_vm2, %v336_v13  ;;  %v237_v20 = vmax.f32 %v235_v16, %v236_v18  ;;  %v243_v21 = vrot.slane %v242_v19, 1  ;;  %v297_v49 = vrot.slane %v296_v43, 4 }
  0x48   : > { %v291_v52 = vadd.f32 %v290_v46, %v289_v40  ;;  %v325_v16 = vld [vmem:[%s848_s27] ss:$2 sm:$0x3] }
  0x49   : > { %v244_v22 = vmax.f32 %v242_v19, %v243_v21  ;;  %v298_v54 = vadd.f32 %v297_v49, %v296_v43 }
  0x4a   : > { %v292_v55 = vrot.slane %v291_v52, 2 }
  0x4b   : > { %v247_v23 = vcombine.low %v237_v20, %v244_v22  ;;  %v299_v56 = vrot.slane %v298_v54, 2 }
  0x4c   : > { %v293_v57 = vadd.f32 %v292_v55, %v291_v52 }
  0x4d   : > { %v249_v24 = vsub.f32 %v225_v1, %v247_v23  ;;  %v300_v58 = vadd.f32 %v299_v56, %v298_v54 }
  0x4e   : > { %v294_v59 = vrot.slane %v293_v57, 1 }
  0x4f   : > { %v250_v25 = vmul.f32 1.442695, %v249_v24  ;;  %v301_v60 = vrot.slane %v300_v58, 1 }
  0x50   : > { %v295_v1 = vadd.f32 %v294_v59, %v293_v57 }
  0x51   : > { %555 = vpow2.f32 %v250_v25  ;;  %v302_v6 = vadd.f32 %v301_v60, %v300_v58 }
  0x5e   : > { %v556_v31 = vpop.eup %555 }
  0x5f   : > { %v253_v32 = vcombine.high %v556_v31, %v556_v31  ;;  %v255_v33 = vsel %vm230_vm0, %v556_v31, 0.0 }
  0x60   : > { %v256_v34 = vrot.slane %v255_v33, 4 }
  0x61   : > { %v262_v36 = vsel %vm230_vm0, %v253_v32, 0.0 }
  0x62   : > { %v257_v37 = vadd.f32 %v256_v34, %v255_v33  ;;  %v263_v38 = vrot.slane %v262_v36, 4 }
  0x64   : > { %v258_v41 = vrot.slane %v257_v37, 2  ;;  %v264_v42 = vadd.f32 %v263_v38, %v262_v36 }
  0x66   : > { %v259_v44 = vadd.f32 %v258_v41, %v257_v37  ;;  %v265_v45 = vrot.slane %v264_v42, 2 }
  0x68   : > { %v260_v47 = vrot.slane %v259_v44, 1  ;;  %v266_v48 = vadd.f32 %v265_v45, %v264_v42 }
  0x6a   : > { %v261_v50 = vadd.f32 %v260_v47, %v259_v44  ;;  %v267_v51 = vrot.slane %v266_v48, 1 }
  0x6c   : > { %v268_v53 = vadd.f32 %v267_v51, %v266_v48  ;;  %557 = vlog2.f32 %v261_v50 }
  0x6e   : > { %559 = vlog2.f32 %v268_v53 }
  0x79   : > { %v558_v63 = vpop.eup %557 }
  0x7a   : > { %v270_v0 = vmul.f32 0.6931472, %v558_v63 }
  0x7b   : > { %v560_v3 = vpop.eup %559 }
  0x7c   : > { %v272_v4 = vmul.f32 0.6931472, %v560_v3  ;;  %v273_v5 = vadd.f32 %v270_v0, %v237_v20 }
  0x7e   : > { %v274_v8 = vadd.f32 %v272_v4, %v244_v22  ;;  %v304_v9 = vsub.f32 %v273_v5, %v295_v1 }
  0x80   : > { %v305_v10 = vsub.f32 %v274_v8, %v302_v6 }
  0x82   : > { %v308_v13 = vcombine.low %v304_v9, %v305_v10 }
  0x84   : > { %v315_v14 = vrot.slane %v308_v13, %v314_v11 }
  0x86   : > { %v322_v15 = vrot.slane %v315_v14, %v314_v11 }
  0x88   : > { %v324_v17 = vsel %vm303_vm1, %v322_v15, 0.0 }
  0x89   : > { %v326_v18 = vadd.f32 %v325_v16, %v324_v17 }
  0x8b   : > { %331 = vst.msk [vmem:[%s848_s27] ss:$2 sm:$0x3] %vm859_vm2, %v326_v18 }
  0x8c   : > { %630 = shalt.err (!%p627_p6)
}
  0x8d   : > { %s631_s15 = scalar_lea.hbm %s351_s7, 64  ;;  %s635_s19 = scalar_lea.hbm %s921_s2, 128 }
  0x8e   : > { %p632_p7 = scmp.ne.s32.totalorder %s351_s7, %s631_s15  ;;  %p636_p4 = scmp.lt.s32.totalorder %s351_s7, %s921_s2 }
  0x8f   : > { %p637_p10 = scmp.lt.s32.totalorder %s635_s19, %s631_s15 }
  0x90   : > { %p633_p1 = pnand %p632_p7, %p774_p9 }
  0x91   : > { %p638_p8 = por %p637_p10, %p636_p4 }
  0x92   : > { %p634_p2 = pneg %p633_p1 }
  0x94   : > { %p639_p0 = pnand %p638_p8, %p634_p2 }
  0x96   : > { %642 = shalt.err (!%p639_p0)
}
  0x97   : > { %489 = dma.vmem_to_hbm [thread:$0]  (%p774_p9), %s354_s28, 64, %s351_s7, %s339_s8  }
  0x98 PF: > { %s365_s20 = sand.u32 1, %s681_s9   ;;  %p930_p3 = scmp.ge.s32.totalorder %s701_s14, 2 }
  0x99   : > { %s366_s26 = scalar_lea.sflag [#allocation4], %s365_s20 }
  0x9a   : > { %p499_p13 = pnand %p930_p3, %p781_p11 }
  0x9c   : > { %p500_p5 = pneg %p499_p13 }
  0x9e   : > { %676 = dma.done.wait (%p500_p5), %s366_s26, 64  }
  0x9f   : > { %678 = vsyncadd (%p500_p5), %s366_s26, 4294967232  ;;  %s21_s14 = sadd.s32 1, %s701_s14   ;;  %s931_s9 = smov %s685_s10 }
  0xa0   : > { %p18_p12 = scmp.ge.s32.totalorder %s21_s14, 4   ;;  %s932_s10 = smov %s689_s11 }
  0xa1   : > { %s933_s11 = smov %s779_s23  ;;  %s934_s12 = smov %s697_s13 }
  0xa2   : > { %s935_s13 = smov %s937_s17  ;;  %20 = sbr.rel (!%p18_p12) target bundleno = 8 (0x8), region = 91 }
  0xa7   :  { %371 = vsyncpa [#allocation3], 1 }
  0xa8   :  { %373 = vsyncpa [#allocation3 + $0x1], 1 }
  0xa9   :  { %374 = vsyncpa [#allocation6], 1 }
  0xaa   :  { %376 = vsyncpa [#allocation6 + $0x1], 1 }
  0xab   :  { %377 = vsyncpa [#allocation4], 1 }
  0xac   :  { %379 = vsyncpa [#allocation4 + $0x1], 1 }

</bundles_post_ra>
